<compile_context>
chip_gen: v5e
topology: v5e:2x2
jax: 0.10.0
libtpu: 0.0.40
codegen_flags: <defaults>
</compile_context>

<pallas_src>
import numpy as np
import jax
import jax.numpy as jnp
from jax.experimental import pallas as pl
from jax.experimental.pallas import tpu as pltpu


# ----------------------------------------------------------------------------
# Pallas kernel
# ----------------------------------------------------------------------------

def _cutouts_kernel(x_ref, a_ref, bt_ref, o_ref):
    """One grid step = one tile of `cut_tile` cutouts over all (batch, chan) planes.

    x_ref : (B*H, W)                 bf16  flattened image planes (constant block)
    a_ref : (CT, P, H)               bf16  row (H-axis) pooling matrices of this tile
    bt_ref: (1, W, CT*P_pad)         bf16  col (W-axis) pooling matrices, lane-concat
    o_ref : (1, CT*B, P, P_pad)      f32   pooled cutouts (last dim lane-padded)
    """
    BH, W = x_ref.shape
    CT, P, H = a_ref.shape
    P_pad = o_ref.shape[-1]
    B = BH // H

    # W-axis pooling of every cutout in the tile as a single big lane-dense MXU
    # matmul: bf16 single pass, f32 accumulation.
    z = jnp.dot(x_ref[...], bt_ref[0],
                preferred_element_type=jnp.float32)          # (B*H, CT*P_pad)
    z = z.astype(jnp.bfloat16)

    # H-axis pooling: per (cutout, plane) 2-D matmuls on aligned sub-views of z
    # (sublane slice at multiples of H, lane slice at multiples of P_pad=128*k).
    for t in range(CT):                                      # static, small
        a_t = a_ref[t]                                       # (P, H)
        for b in range(B):                                   # static
            z_tb = z[b * H:(b + 1) * H, t * P_pad:(t + 1) * P_pad]   # (H, P_pad)
            o_ref[0, t * B + b] = jnp.dot(
                a_t, z_tb, preferred_element_type=jnp.float32)        # (P, P_pad)


@jax.jit
def _cutouts_pallas(x, a, bt_tiles):
    """x: (N,C,H,W) f32; a: (cutn,P,H) bf16; bt_tiles: (n_tiles,W,cut_tile*P_pad) bf16."""
    N, C, H, W = x.shape
    cutn, P, _ = a.shape
    n_tiles, _, ctp = bt_tiles.shape
    cut_tile = cutn // n_tiles
    P_pad = ctp // cut_tile
    B = N * C

    x2d = x.astype(jnp.bfloat16).reshape(B * H, W)           # free reshape, halves DMA bytes

    out = pl.pallas_call(
        _cutouts_kernel,
        out_shape=jax.ShapeDtypeStruct((n_tiles, cut_tile * B, P, P_pad), jnp.float32),
        grid=(n_tiles,),
        in_specs=[
            # x is identical for every cutout tile: constant block index -> fetched once.
            pl.BlockSpec((B * H, W), lambda i: (0, 0)),
            pl.BlockSpec((cut_tile, P, H), lambda i: (i, 0, 0)),
            pl.BlockSpec((1, W, cut_tile * P_pad), lambda i: (i, 0, 0)),
        ],
        out_specs=pl.BlockSpec((1, cut_tile * B, P, P_pad), lambda i: (i, 0, 0, 0)),
        compiler_params=pltpu.CompilerParams(
            dimension_semantics=("parallel",)),
    )(x2d, a, bt_tiles)

    # Drop the lane padding, restore torch.cat ordering (cutout-major, then batch).
    out = out.reshape(cutn, N, C, P, P_pad)[..., :P]
    return out.reshape(cutn * N, C, P, P)


# ----------------------------------------------------------------------------
# Host-side geometry sampling + pooling-matrix construction
# ----------------------------------------------------------------------------

def _pool_matrix(side, size, offset, out_size):
    """(out_size, side) matrix folding the cutout slice [offset, offset+size)
    and the adaptive-average-pool windows along one spatial axis."""
    m = np.zeros((out_size, side), dtype=np.float32)
    for p in range(out_size):
        s = (p * size) // out_size
        e = -(-((p + 1) * size) // out_size)          # ceil((p+1)*size/out_size)
        m[p, offset + s: offset + e] = 1.0 / (e - s)
    return m


def _choose_cut_tile(cutn, B, H, W, P, P_pad, budget_bytes=20 * 1024 * 1024):
    """Largest divisor of cutn whose per-grid-step VMEM footprint fits the budget."""
    best = 1
    for ct in range(1, cutn + 1):
        if cutn % ct:
            continue
        x_b = B * H * W * 2 * 2                 # resident bf16 x (buffered bound)
        z_b = B * H * ct * P_pad * (4 + 2)      # f32 accumulator + bf16 copy
        bt_b = W * ct * P_pad * 2 * 2
        a_b = ct * P * H * 2 * 2
        out_b = ct * B * P * P_pad * 4 * 2      # double-buffered output tile
        if x_b + z_b + bt_b + a_b + out_b <= budget_bytes:
            best = ct
    return best


class MakeCutouts:
    """JAX/Pallas port of the PyTorch MakeCutouts module."""

    def __init__(self, cut_size, cutn, cut_pow=1.0, seed=0, cut_tile=None):
        self.cut_size = cut_size
        self.cutn = cutn
        self.cut_pow = cut_pow
        self.cut_tile = cut_tile
        self._rng = np.random.default_rng(seed)

    def sample_geometry(self, sideY, sideX):
        # Mirrors the torch.rand / torch.randint draws in the reference forward.
        max_size = min(sideX, sideY)
        min_size = min(sideX, sideY, self.cut_size)
        geo = []
        for _ in range(self.cutn):
            size = int(float(self._rng.random()) ** self.cut_pow
                       * (max_size - min_size) + min_size)
            offsetx = int(self._rng.integers(0, sideX - size + 1))
            offsety = int(self._rng.integers(0, sideY - size + 1))
            geo.append((size, offsety, offsetx))
        return geo

    def __call__(self, x, geometry=None):
        N, C, H, W = x.shape
        if geometry is None:
            geometry = self.sample_geometry(H, W)
        P = self.cut_size
        P_pad = -(-P // 128) * 128                    # lane-dense padded output width

        a = np.stack([_pool_matrix(H, s, oy, P)
                      for (s, oy, ox) in geometry])                       # (cutn, P, H)
        bt = np.zeros((self.cutn, W, P_pad), np.float32)                  # zero pad cols
        for i, (s, oy, ox) in enumerate(geometry):
            bt[i, :, :P] = _pool_matrix(W, s, ox, P).T

        cut_tile = self.cut_tile or _choose_cut_tile(self.cutn, N * C, H, W, P, P_pad)
        assert self.cutn % cut_tile == 0
        n_tiles = self.cutn // cut_tile
        # Lane-concatenate each tile's column matrices: (n_tiles, W, cut_tile*P_pad).
        bt_tiles = (bt.reshape(n_tiles, cut_tile, W, P_pad)
                      .transpose(0, 2, 1, 3)
                      .reshape(n_tiles, W, cut_tile * P_pad))

        return _cutouts_pallas(x,
                               jnp.asarray(a, dtype=jnp.bfloat16),
                               jnp.asarray(bt_tiles, dtype=jnp.bfloat16))


# ----------------------------------------------------------------------------
# Pure numpy reference (direct slice + adaptive_avg_pool2d), for validation
# ----------------------------------------------------------------------------

def _adaptive_avg_pool2d_np(x, out_size):
    N, C, H, W = x.shape
    out = np.zeros((N, C, out_size, out_size), dtype=np.float64)
    for p in range(out_size):
        y0, y1 = (p * H) // out_size, -(-((p + 1) * H) // out_size)
        for q in range(out_size):
            x0, x1 = (q * W) // out_size, -(-((q + 1) * W) // out_size)
            out[:, :, p, q] = x[:, :, y0:y1, x0:x1].mean(axis=(2, 3))
    return out


def make_cutouts_reference(x, geometry, cut_size):
    x = np.asarray(x, dtype=np.float64)
    outs = []
    for size, oy, ox in geometry:
        cut = x[:, :, oy:oy + size, ox:ox + size]
        outs.append(_adaptive_avg_pool2d_np(cut, cut_size))
    return np.concatenate(outs, axis=0)


# ----------------------------------------------------------------------------

if __name__ == "__main__":
    key = jax.random.PRNGKey(0)
    N, C, H, W = 2, 4, 16, 16
    cut_size, cutn, cut_pow = 8, 4, 1.0

    x = jax.random.normal(key, (N, C, H, W), jnp.float32)

    mc = MakeCutouts(cut_size, cutn, cut_pow, seed=0)
    geometry = mc.sample_geometry(H, W)          # fixed so the reference can reuse it

    out = mc(x, geometry=geometry)
    out = jax.block_until_ready(out)

    assert out.shape == (cutn * N, C, cut_size, cut_size), out.shape
    assert bool(jnp.all(jnp.isfinite(out)))

    # Structural-correctness check (wrong window/offset/axes => O(1) errors);
    # tolerance covers the bf16-input / f32-accumulate MXU path.
    ref = make_cutouts_reference(np.asarray(x), geometry, cut_size)
    np.testing.assert_allclose(np.asarray(out), ref, rtol=2e-2, atol=2e-2)

    print("KERNEL_OK")
</pallas_src>

<mosaic_0001>
module attributes {stable_mosaic.version = 11 : i64} {
  func.func @_cutouts_kernel(%arg0: i32, %arg1: memref<128x16xbf16, #tpu.memory_space<vmem>>, %arg2: memref<4x8x16xbf16, #tpu.memory_space<vmem>>, %arg3: memref<1x16x512xbf16, #tpu.memory_space<vmem>>, %arg4: memref<1x32x8x128xf32, #tpu.memory_space<vmem>>) attributes {dimension_semantics = [#tpu.dimension_semantics<parallel>], iteration_bounds = array<i64: 1>, scalar_prefetch = 0 : i64, scratch_operands = 0 : i64, tpu.core_type = #tpu.core_type<tc>, window_params = [{pipeline_mode = #tpu.pipeline_mode<synchronous>, transform_indices = @transform_0, window_bounds = array<i64: 128, 16>}, {transform_indices = @transform_1, window_bounds = array<i64: 4, 8, 16>}, {transform_indices = @transform_2, window_bounds = array<i64: 1, 16, 512>}, {transform_indices = @transform_3, window_bounds = array<i64: 1, 32, 8, 128>}]} {
    %c0 = arith.constant 0 : index
    %c0_0 = arith.constant 0 : index
    %0 = vector.load %arg1[%c0, %c0_0] : memref<128x16xbf16, #tpu.memory_space<vmem>>, vector<128x16xbf16>
    %c0_1 = arith.constant 0 : index
    %c0_2 = arith.constant 0 : index
    %c0_3 = arith.constant 0 : index
    %1 = vector.load %arg3[%c0_1, %c0_2, %c0_3] : memref<1x16x512xbf16, #tpu.memory_space<vmem>>, vector<1x16x512xbf16>
    %2 = vector.shape_cast %1 : vector<1x16x512xbf16> to vector<16x512xbf16>
    %cst = arith.constant dense<0.000000e+00> : vector<128x512xf32>
    %3 = tpu.matmul %0, %2, %cst {dimension_numbers = #tpu.dot_dimension_numbers<[1], [0], [0], [1], [0, 0, 1, 1], [], []>} : vector<128x16xbf16>, vector<16x512xbf16>, vector<128x512xf32> -> vector<128x512xf32>
    %4 = arith.truncf %3 : vector<128x512xf32> to vector<128x512xbf16>
    %c0_4 = arith.constant 0 : index
    %c0_5 = arith.constant 0 : index
    %c0_6 = arith.constant 0 : index
    %5 = vector.load %arg2[%c0_4, %c0_5, %c0_6] : memref<4x8x16xbf16, #tpu.memory_space<vmem>>, vector<1x8x16xbf16>
    %6 = vector.shape_cast %5 : vector<1x8x16xbf16> to vector<8x16xbf16>
    %7 = vector.extract_strided_slice %4 {offsets = [0, 0], sizes = [16, 128], strides = [1, 1]} : vector<128x512xbf16> to vector<16x128xbf16>
    %cst_7 = arith.constant dense<0.000000e+00> : vector<8x128xf32>
    %8 = tpu.matmul %6, %7, %cst_7 {dimension_numbers = #tpu.dot_dimension_numbers<[1], [0], [0], [1], [0, 0, 1, 1], [], []>} : vector<8x16xbf16>, vector<16x128xbf16>, vector<8x128xf32> -> vector<8x128xf32>
    %c0_8 = arith.constant 0 : index
    %c0_9 = arith.constant 0 : index
    %c0_10 = arith.constant 0 : index
    %c0_11 = arith.constant 0 : index
    %9 = vector.load %arg4[%c0_8, %c0_9, %c0_10, %c0_11] : memref<1x32x8x128xf32, #tpu.memory_space<vmem>>, vector<1x1x8x128xf32>
    %10 = vector.shape_cast %9 : vector<1x1x8x128xf32> to vector<8x128xf32>
    %11 = vector.shape_cast %8 : vector<8x128xf32> to vector<1x1x8x128xf32>
    tpu.vector_store %arg4[%c0_8, %c0_9, %c0_10, %c0_11], %11 {strides = array<i32>} : memref<1x32x8x128xf32, #tpu.memory_space<vmem>>, vector<1x1x8x128xf32>,
    %12 = vector.extract_strided_slice %4 {offsets = [16, 0], sizes = [16, 128], strides = [1, 1]} : vector<128x512xbf16> to vector<16x128xbf16>
    %cst_12 = arith.constant dense<0.000000e+00> : vector<8x128xf32>
    %13 = tpu.matmul %6, %12, %cst_12 {dimension_numbers = #tpu.dot_dimension_numbers<[1], [0], [0], [1], [0, 0, 1, 1], [], []>} : vector<8x16xbf16>, vector<16x128xbf16>, vector<8x128xf32> -> vector<8x128xf32>
    %c0_13 = arith.constant 0 : index
    %c1 = arith.constant 1 : index
    %c0_14 = arith.constant 0 : index
    %c0_15 = arith.constant 0 : index
    %14 = vector.load %arg4[%c0_13, %c1, %c0_14, %c0_15] : memref<1x32x8x128xf32, #tpu.memory_space<vmem>>, vector<1x1x8x128xf32>
    %15 = vector.shape_cast %14 : vector<1x1x8x128xf32> to vector<8x128xf32>
    %16 = vector.shape_cast %13 : vector<8x128xf32> to vector<1x1x8x128xf32>
    tpu.vector_store %arg4[%c0_13, %c1, %c0_14, %c0_15], %16 {strides = array<i32>} : memref<1x32x8x128xf32, #tpu.memory_space<vmem>>, vector<1x1x8x128xf32>,
    %17 = vector.extract_strided_slice %4 {offsets = [32, 0], sizes = [16, 128], strides = [1, 1]} : vector<128x512xbf16> to vector<16x128xbf16>
    %cst_16 = arith.constant dense<0.000000e+00> : vector<8x128xf32>
    %18 = tpu.matmul %6, %17, %cst_16 {dimension_numbers = #tpu.dot_dimension_numbers<[1], [0], [0], [1], [0, 0, 1, 1], [], []>} : vector<8x16xbf16>, vector<16x128xbf16>, vector<8x128xf32> -> vector<8x128xf32>
    %c0_17 = arith.constant 0 : index
    %c2 = arith.constant 2 : index
    %c0_18 = arith.constant 0 : index
    %c0_19 = arith.constant 0 : index
    %19 = vector.load %arg4[%c0_17, %c2, %c0_18, %c0_19] : memref<1x32x8x128xf32, #tpu.memory_space<vmem>>, vector<1x1x8x128xf32>
    %20 = vector.shape_cast %19 : vector<1x1x8x128xf32> to vector<8x128xf32>
    %21 = vector.shape_cast %18 : vector<8x128xf32> to vector<1x1x8x128xf32>
    tpu.vector_store %arg4[%c0_17, %c2, %c0_18, %c0_19], %21 {strides = array<i32>} : memref<1x32x8x128xf32, #tpu.memory_space<vmem>>, vector<1x1x8x128xf32>,
    %22 = vector.extract_strided_slice %4 {offsets = [48, 0], sizes = [16, 128], strides = [1, 1]} : vector<128x512xbf16> to vector<16x128xbf16>
    %cst_20 = arith.constant dense<0.000000e+00> : vector<8x128xf32>
    %23 = tpu.matmul %6, %22, %cst_20 {dimension_numbers = #tpu.dot_dimension_numbers<[1], [0], [0], [1], [0, 0, 1, 1], [], []>} : vector<8x16xbf16>, vector<16x128xbf16>, vector<8x128xf32> -> vector<8x128xf32>
    %c0_21 = arith.constant 0 : index
    %c3 = arith.constant 3 : index
    %c0_22 = arith.constant 0 : index
    %c0_23 = arith.constant 0 : index
    %24 = vector.load %arg4[%c0_21, %c3, %c0_22, %c0_23] : memref<1x32x8x128xf32, #tpu.memory_space<vmem>>, vector<1x1x8x128xf32>
    %25 = vector.shape_cast %24 : vector<1x1x8x128xf32> to vector<8x128xf32>
    %26 = vector.shape_cast %23 : vector<8x128xf32> to vector<1x1x8x128xf32>
    tpu.vector_store %arg4[%c0_21, %c3, %c0_22, %c0_23], %26 {strides = array<i32>} : memref<1x32x8x128xf32, #tpu.memory_space<vmem>>, vector<1x1x8x128xf32>,
    %27 = vector.extract_strided_slice %4 {offsets = [64, 0], sizes = [16, 128], strides = [1, 1]} : vector<128x512xbf16> to vector<16x128xbf16>
    %cst_24 = arith.constant dense<0.000000e+00> : vector<8x128xf32>
    %28 = tpu.matmul %6, %27, %cst_24 {dimension_numbers = #tpu.dot_dimension_numbers<[1], [0], [0], [1], [0, 0, 1, 1], [], []>} : vector<8x16xbf16>, vector<16x128xbf16>, vector<8x128xf32> -> vector<8x128xf32>
    %c0_25 = arith.constant 0 : index
    %c4 = arith.constant 4 : index
    %c0_26 = arith.constant 0 : index
    %c0_27 = arith.constant 0 : index
    %29 = vector.load %arg4[%c0_25, %c4, %c0_26, %c0_27] : memref<1x32x8x128xf32, #tpu.memory_space<vmem>>, vector<1x1x8x128xf32>
    %30 = vector.shape_cast %29 : vector<1x1x8x128xf32> to vector<8x128xf32>
    %31 = vector.shape_cast %28 : vector<8x128xf32> to vector<1x1x8x128xf32>
    tpu.vector_store %arg4[%c0_25, %c4, %c0_26, %c0_27], %31 {strides = array<i32>} : memref<1x32x8x128xf32, #tpu.memory_space<vmem>>, vector<1x1x8x128xf32>,
    %32 = vector.extract_strided_slice %4 {offsets = [80, 0], sizes = [16, 128], strides = [1, 1]} : vector<128x512xbf16> to vector<16x128xbf16>
    %cst_28 = arith.constant dense<0.000000e+00> : vector<8x128xf32>
    %33 = tpu.matmul %6, %32, %cst_28 {dimension_numbers = #tpu.dot_dimension_numbers<[1], [0], [0], [1], [0, 0, 1, 1], [], []>} : vector<8x16xbf16>, vector<16x128xbf16>, vector<8x128xf32> -> vector<8x128xf32>
    %c0_29 = arith.constant 0 : index
    %c5 = arith.constant 5 : index
    %c0_30 = arith.constant 0 : index
    %c0_31 = arith.constant 0 : index
    %34 = vector.load %arg4[%c0_29, %c5, %c0_30, %c0_31] : memref<1x32x8x128xf32, #tpu.memory_space<vmem>>, vector<1x1x8x128xf32>
    %35 = vector.shape_cast %34 : vector<1x1x8x128xf32> to vector<8x128xf32>
    %36 = vector.shape_cast %33 : vector<8x128xf32> to vector<1x1x8x128xf32>
    tpu.vector_store %arg4[%c0_29, %c5, %c0_30, %c0_31], %36 {strides = array<i32>} : memref<1x32x8x128xf32, #tpu.memory_space<vmem>>, vector<1x1x8x128xf32>,
    %37 = vector.extract_strided_slice %4 {offsets = [96, 0], sizes = [16, 128], strides = [1, 1]} : vector<128x512xbf16> to vector<16x128xbf16>
    %cst_32 = arith.constant dense<0.000000e+00> : vector<8x128xf32>
    %38 = tpu.matmul %6, %37, %cst_32 {dimension_numbers = #tpu.dot_dimension_numbers<[1], [0], [0], [1], [0, 0, 1, 1], [], []>} : vector<8x16xbf16>, vector<16x128xbf16>, vector<8x128xf32> -> vector<8x128xf32>
    %c0_33 = arith.constant 0 : index
    %c6 = arith.constant 6 : index
    %c0_34 = arith.constant 0 : index
    %c0_35 = arith.constant 0 : index
    %39 = vector.load %arg4[%c0_33, %c6, %c0_34, %c0_35] : memref<1x32x8x128xf32, #tpu.memory_space<vmem>>, vector<1x1x8x128xf32>
    %40 = vector.shape_cast %39 : vector<1x1x8x128xf32> to vector<8x128xf32>
    %41 = vector.shape_cast %38 : vector<8x128xf32> to vector<1x1x8x128xf32>
    tpu.vector_store %arg4[%c0_33, %c6, %c0_34, %c0_35], %41 {strides = array<i32>} : memref<1x32x8x128xf32, #tpu.memory_space<vmem>>, vector<1x1x8x128xf32>,
    %42 = vector.extract_strided_slice %4 {offsets = [112, 0], sizes = [16, 128], strides = [1, 1]} : vector<128x512xbf16> to vector<16x128xbf16>
    %cst_36 = arith.constant dense<0.000000e+00> : vector<8x128xf32>
    %43 = tpu.matmul %6, %42, %cst_36 {dimension_numbers = #tpu.dot_dimension_numbers<[1], [0], [0], [1], [0, 0, 1, 1], [], []>} : vector<8x16xbf16>, vector<16x128xbf16>, vector<8x128xf32> -> vector<8x128xf32>
    %c0_37 = arith.constant 0 : index
    %c7 = arith.constant 7 : index
    %c0_38 = arith.constant 0 : index
    %c0_39 = arith.constant 0 : index
    %44 = vector.load %arg4[%c0_37, %c7, %c0_38, %c0_39] : memref<1x32x8x128xf32, #tpu.memory_space<vmem>>, vector<1x1x8x128xf32>
    %45 = vector.shape_cast %44 : vector<1x1x8x128xf32> to vector<8x128xf32>
    %46 = vector.shape_cast %43 : vector<8x128xf32> to vector<1x1x8x128xf32>
    tpu.vector_store %arg4[%c0_37, %c7, %c0_38, %c0_39], %46 {strides = array<i32>} : memref<1x32x8x128xf32, #tpu.memory_space<vmem>>, vector<1x1x8x128xf32>,
    %c1_40 = arith.constant 1 : index
    %c0_41 = arith.constant 0 : index
    %c0_42 = arith.constant 0 : index
    %47 = vector.load %arg2[%c1_40, %c0_41, %c0_42] : memref<4x8x16xbf16, #tpu.memory_space<vmem>>, vector<1x8x16xbf16>
    %48 = vector.shape_cast %47 : vector<1x8x16xbf16> to vector<8x16xbf16>
    %49 = vector.extract_strided_slice %4 {offsets = [0, 128], sizes = [16, 128], strides = [1, 1]} : vector<128x512xbf16> to vector<16x128xbf16>
    %cst_43 = arith.constant dense<0.000000e+00> : vector<8x128xf32>
    %50 = tpu.matmul %48, %49, %cst_43 {dimension_numbers = #tpu.dot_dimension_numbers<[1], [0], [0], [1], [0, 0, 1, 1], [], []>} : vector<8x16xbf16>, vector<16x128xbf16>, vector<8x128xf32> -> vector<8x128xf32>
    %c0_44 = arith.constant 0 : index
    %c8 = arith.constant 8 : index
    %c0_45 = arith.constant 0 : index
    %c0_46 = arith.constant 0 : index
    %51 = vector.load %arg4[%c0_44, %c8, %c0_45, %c0_46] : memref<1x32x8x128xf32, #tpu.memory_space<vmem>>, vector<1x1x8x128xf32>
    %52 = vector.shape_cast %51 : vector<1x1x8x128xf32> to vector<8x128xf32>
    %53 = vector.shape_cast %50 : vector<8x128xf32> to vector<1x1x8x128xf32>
    tpu.vector_store %arg4[%c0_44, %c8, %c0_45, %c0_46], %53 {strides = array<i32>} : memref<1x32x8x128xf32, #tpu.memory_space<vmem>>, vector<1x1x8x128xf32>,
    %54 = vector.extract_strided_slice %4 {offsets = [16, 128], sizes = [16, 128], strides = [1, 1]} : vector<128x512xbf16> to vector<16x128xbf16>
    %cst_47 = arith.constant dense<0.000000e+00> : vector<8x128xf32>
    %55 = tpu.matmul %48, %54, %cst_47 {dimension_numbers = #tpu.dot_dimension_numbers<[1], [0], [0], [1], [0, 0, 1, 1], [], []>} : vector<8x16xbf16>, vector<16x128xbf16>, vector<8x128xf32> -> vector<8x128xf32>
    %c0_48 = arith.constant 0 : index
    %c9 = arith.constant 9 : index
    %c0_49 = arith.constant 0 : index
    %c0_50 = arith.constant 0 : index
    %56 = vector.load %arg4[%c0_48, %c9, %c0_49, %c0_50] : memref<1x32x8x128xf32, #tpu.memory_space<vmem>>, vector<1x1x8x128xf32>
    %57 = vector.shape_cast %56 : vector<1x1x8x128xf32> to vector<8x128xf32>
    %58 = vector.shape_cast %55 : vector<8x128xf32> to vector<1x1x8x128xf32>
    tpu.vector_store %arg4[%c0_48, %c9, %c0_49, %c0_50], %58 {strides = array<i32>} : memref<1x32x8x128xf32, #tpu.memory_space<vmem>>, vector<1x1x8x128xf32>,
    %59 = vector.extract_strided_slice %4 {offsets = [32, 128], sizes = [16, 128], strides = [1, 1]} : vector<128x512xbf16> to vector<16x128xbf16>
    %cst_51 = arith.constant dense<0.000000e+00> : vector<8x128xf32>
    %60 = tpu.matmul %48, %59, %cst_51 {dimension_numbers = #tpu.dot_dimension_numbers<[1], [0], [0], [1], [0, 0, 1, 1], [], []>} : vector<8x16xbf16>, vector<16x128xbf16>, vector<8x128xf32> -> vector<8x128xf32>
    %c0_52 = arith.constant 0 : index
    %c10 = arith.constant 10 : index
    %c0_53 = arith.constant 0 : index
    %c0_54 = arith.constant 0 : index
    %61 = vector.load %arg4[%c0_52, %c10, %c0_53, %c0_54] : memref<1x32x8x128xf32, #tpu.memory_space<vmem>>, vector<1x1x8x128xf32>
    %62 = vector.shape_cast %61 : vector<1x1x8x128xf32> to vector<8x128xf32>
    %63 = vector.shape_cast %60 : vector<8x128xf32> to vector<1x1x8x128xf32>
    tpu.vector_store %arg4[%c0_52, %c10, %c0_53, %c0_54], %63 {strides = array<i32>} : memref<1x32x8x128xf32, #tpu.memory_space<vmem>>, vector<1x1x8x128xf32>,
    %64 = vector.extract_strided_slice %4 {offsets = [48, 128], sizes = [16, 128], strides = [1, 1]} : vector<128x512xbf16> to vector<16x128xbf16>
    %cst_55 = arith.constant dense<0.000000e+00> : vector<8x128xf32>
    %65 = tpu.matmul %48, %64, %cst_55 {dimension_numbers = #tpu.dot_dimension_numbers<[1], [0], [0], [1], [0, 0, 1, 1], [], []>} : vector<8x16xbf16>, vector<16x128xbf16>, vector<8x128xf32> -> vector<8x128xf32>
    %c0_56 = arith.constant 0 : index
    %c11 = arith.constant 11 : index
    %c0_57 = arith.constant 0 : index
    %c0_58 = arith.constant 0 : index
    %66 = vector.load %arg4[%c0_56, %c11, %c0_57, %c0_58] : memref<1x32x8x128xf32, #tpu.memory_space<vmem>>, vector<1x1x8x128xf32>
    %67 = vector.shape_cast %66 : vector<1x1x8x128xf32> to vector<8x128xf32>
    %68 = vector.shape_cast %65 : vector<8x128xf32> to vector<1x1x8x128xf32>
    tpu.vector_store %arg4[%c0_56, %c11, %c0_57, %c0_58], %68 {strides = array<i32>} : memref<1x32x8x128xf32, #tpu.memory_space<vmem>>, vector<1x1x8x128xf32>,
    %69 = vector.extract_strided_slice %4 {offsets = [64, 128], sizes = [16, 128], strides = [1, 1]} : vector<128x512xbf16> to vector<16x128xbf16>
    %cst_59 = arith.constant dense<0.000000e+00> : vector<8x128xf32>
    %70 = tpu.matmul %48, %69, %cst_59 {dimension_numbers = #tpu.dot_dimension_numbers<[1], [0], [0], [1], [0, 0, 1, 1], [], []>} : vector<8x16xbf16>, vector<16x128xbf16>, vector<8x128xf32> -> vector<8x128xf32>
    %c0_60 = arith.constant 0 : index
    %c12 = arith.constant 12 : index
    %c0_61 = arith.constant 0 : index
    %c0_62 = arith.constant 0 : index
    %71 = vector.load %arg4[%c0_60, %c12, %c0_61, %c0_62] : memref<1x32x8x128xf32, #tpu.memory_space<vmem>>, vector<1x1x8x128xf32>
    %72 = vector.shape_cast %71 : vector<1x1x8x128xf32> to vector<8x128xf32>
    %73 = vector.shape_cast %70 : vector<8x128xf32> to vector<1x1x8x128xf32>
    tpu.vector_store %arg4[%c0_60, %c12, %c0_61, %c0_62], %73 {strides = array<i32>} : memref<1x32x8x128xf32, #tpu.memory_space<vmem>>, vector<1x1x8x128xf32>,
    %74 = vector.extract_strided_slice %4 {offsets = [80, 128], sizes = [16, 128], strides = [1, 1]} : vector<128x512xbf16> to vector<16x128xbf16>
    %cst_63 = arith.constant dense<0.000000e+00> : vector<8x128xf32>
    %75 = tpu.matmul %48, %74, %cst_63 {dimension_numbers = #tpu.dot_dimension_numbers<[1], [0], [0], [1], [0, 0, 1, 1], [], []>} : vector<8x16xbf16>, vector<16x128xbf16>, vector<8x128xf32> -> vector<8x128xf32>
    %c0_64 = arith.constant 0 : index
    %c13 = arith.constant 13 : index
    %c0_65 = arith.constant 0 : index
    %c0_66 = arith.constant 0 : index
    %76 = vector.load %arg4[%c0_64, %c13, %c0_65, %c0_66] : memref<1x32x8x128xf32, #tpu.memory_space<vmem>>, vector<1x1x8x128xf32>
    %77 = vector.shape_cast %76 : vector<1x1x8x128xf32> to vector<8x128xf32>
    %78 = vector.shape_cast %75 : vector<8x128xf32> to vector<1x1x8x128xf32>
    tpu.vector_store %arg4[%c0_64, %c13, %c0_65, %c0_66], %78 {strides = array<i32>} : memref<1x32x8x128xf32, #tpu.memory_space<vmem>>, vector<1x1x8x128xf32>,
    %79 = vector.extract_strided_slice %4 {offsets = [96, 128], sizes = [16, 128], strides = [1, 1]} : vector<128x512xbf16> to vector<16x128xbf16>
    %cst_67 = arith.constant dense<0.000000e+00> : vector<8x128xf32>
    %80 = tpu.matmul %48, %79, %cst_67 {dimension_numbers = #tpu.dot_dimension_numbers<[1], [0], [0], [1], [0, 0, 1, 1], [], []>} : vector<8x16xbf16>, vector<16x128xbf16>, vector<8x128xf32> -> vector<8x128xf32>
    %c0_68 = arith.constant 0 : index
    %c14 = arith.constant 14 : index
    %c0_69 = arith.constant 0 : index
    %c0_70 = arith.constant 0 : index
    %81 = vector.load %arg4[%c0_68, %c14, %c0_69, %c0_70] : memref<1x32x8x128xf32, #tpu.memory_space<vmem>>, vector<1x1x8x128xf32>
    %82 = vector.shape_cast %81 : vector<1x1x8x128xf32> to vector<8x128xf32>
    %83 = vector.shape_cast %80 : vector<8x128xf32> to vector<1x1x8x128xf32>
    tpu.vector_store %arg4[%c0_68, %c14, %c0_69, %c0_70], %83 {strides = array<i32>} : memref<1x32x8x128xf32, #tpu.memory_space<vmem>>, vector<1x1x8x128xf32>,
    %84 = vector.extract_strided_slice %4 {offsets = [112, 128], sizes = [16, 128], strides = [1, 1]} : vector<128x512xbf16> to vector<16x128xbf16>
    %cst_71 = arith.constant dense<0.000000e+00> : vector<8x128xf32>
    %85 = tpu.matmul %48, %84, %cst_71 {dimension_numbers = #tpu.dot_dimension_numbers<[1], [0], [0], [1], [0, 0, 1, 1], [], []>} : vector<8x16xbf16>, vector<16x128xbf16>, vector<8x128xf32> -> vector<8x128xf32>
    %c0_72 = arith.constant 0 : index
    %c15 = arith.constant 15 : index
    %c0_73 = arith.constant 0 : index
    %c0_74 = arith.constant 0 : index
    %86 = vector.load %arg4[%c0_72, %c15, %c0_73, %c0_74] : memref<1x32x8x128xf32, #tpu.memory_space<vmem>>, vector<1x1x8x128xf32>
    %87 = vector.shape_cast %86 : vector<1x1x8x128xf32> to vector<8x128xf32>
    %88 = vector.shape_cast %85 : vector<8x128xf32> to vector<1x1x8x128xf32>
    tpu.vector_store %arg4[%c0_72, %c15, %c0_73, %c0_74], %88 {strides = array<i32>} : memref<1x32x8x128xf32, #tpu.memory_space<vmem>>, vector<1x1x8x128xf32>,
    %c2_75 = arith.constant 2 : index
    %c0_76 = arith.constant 0 : index
    %c0_77 = arith.constant 0 : index
    %89 = vector.load %arg2[%c2_75, %c0_76, %c0_77] : memref<4x8x16xbf16, #tpu.memory_space<vmem>>, vector<1x8x16xbf16>
    %90 = vector.shape_cast %89 : vector<1x8x16xbf16> to vector<8x16xbf16>
    %91 = vector.extract_strided_slice %4 {offsets = [0, 256], sizes = [16, 128], strides = [1, 1]} : vector<128x512xbf16> to vector<16x128xbf16>
    %cst_78 = arith.constant dense<0.000000e+00> : vector<8x128xf32>
    %92 = tpu.matmul %90, %91, %cst_78 {dimension_numbers = #tpu.dot_dimension_numbers<[1], [0], [0], [1], [0, 0, 1, 1], [], []>} : vector<8x16xbf16>, vector<16x128xbf16>, vector<8x128xf32> -> vector<8x128xf32>
    %c0_79 = arith.constant 0 : index
    %c16 = arith.constant 16 : index
    %c0_80 = arith.constant 0 : index
    %c0_81 = arith.constant 0 : index
    %93 = vector.load %arg4[%c0_79, %c16, %c0_80, %c0_81] : memref<1x32x8x128xf32, #tpu.memory_space<vmem>>, vector<1x1x8x128xf32>
    %94 = vector.shape_cast %93 : vector<1x1x8x128xf32> to vector<8x128xf32>
    %95 = vector.shape_cast %92 : vector<8x128xf32> to vector<1x1x8x128xf32>
    tpu.vector_store %arg4[%c0_79, %c16, %c0_80, %c0_81], %95 {strides = array<i32>} : memref<1x32x8x128xf32, #tpu.memory_space<vmem>>, vector<1x1x8x128xf32>,
    %96 = vector.extract_strided_slice %4 {offsets = [16, 256], sizes = [16, 128], strides = [1, 1]} : vector<128x512xbf16> to vector<16x128xbf16>
    %cst_82 = arith.constant dense<0.000000e+00> : vector<8x128xf32>
    %97 = tpu.matmul %90, %96, %cst_82 {dimension_numbers = #tpu.dot_dimension_numbers<[1], [0], [0], [1], [0, 0, 1, 1], [], []>} : vector<8x16xbf16>, vector<16x128xbf16>, vector<8x128xf32> -> vector<8x128xf32>
    %c0_83 = arith.constant 0 : index
    %c17 = arith.constant 17 : index
    %c0_84 = arith.constant 0 : index
    %c0_85 = arith.constant 0 : index
    %98 = vector.load %arg4[%c0_83, %c17, %c0_84, %c0_85] : memref<1x32x8x128xf32, #tpu.memory_space<vmem>>, vector<1x1x8x128xf32>
    %99 = vector.shape_cast %98 : vector<1x1x8x128xf32> to vector<8x128xf32>
    %100 = vector.shape_cast %97 : vector<8x128xf32> to vector<1x1x8x128xf32>
    tpu.vector_store %arg4[%c0_83, %c17, %c0_84, %c0_85], %100 {strides = array<i32>} : memref<1x32x8x128xf32, #tpu.memory_space<vmem>>, vector<1x1x8x128xf32>,
    %101 = vector.extract_strided_slice %4 {offsets = [32, 256], sizes = [16, 128], strides = [1, 1]} : vector<128x512xbf16> to vector<16x128xbf16>
    %cst_86 = arith.constant dense<0.000000e+00> : vector<8x128xf32>
    %102 = tpu.matmul %90, %101, %cst_86 {dimension_numbers = #tpu.dot_dimension_numbers<[1], [0], [0], [1], [0, 0, 1, 1], [], []>} : vector<8x16xbf16>, vector<16x128xbf16>, vector<8x128xf32> -> vector<8x128xf32>
    %c0_87 = arith.constant 0 : index
    %c18 = arith.constant 18 : index
    %c0_88 = arith.constant 0 : index
    %c0_89 = arith.constant 0 : index
    %103 = vector.load %arg4[%c0_87, %c18, %c0_88, %c0_89] : memref<1x32x8x128xf32, #tpu.memory_space<vmem>>, vector<1x1x8x128xf32>
    %104 = vector.shape_cast %103 : vector<1x1x8x128xf32> to vector<8x128xf32>
    %105 = vector.shape_cast %102 : vector<8x128xf32> to vector<1x1x8x128xf32>
    tpu.vector_store %arg4[%c0_87, %c18, %c0_88, %c0_89], %105 {strides = array<i32>} : memref<1x32x8x128xf32, #tpu.memory_space<vmem>>, vector<1x1x8x128xf32>,
    %106 = vector.extract_strided_slice %4 {offsets = [48, 256], sizes = [16, 128], strides = [1, 1]} : vector<128x512xbf16> to vector<16x128xbf16>
    %cst_90 = arith.constant dense<0.000000e+00> : vector<8x128xf32>
    %107 = tpu.matmul %90, %106, %cst_90 {dimension_numbers = #tpu.dot_dimension_numbers<[1], [0], [0], [1], [0, 0, 1, 1], [], []>} : vector<8x16xbf16>, vector<16x128xbf16>, vector<8x128xf32> -> vector<8x128xf32>
    %c0_91 = arith.constant 0 : index
    %c19 = arith.constant 19 : index
    %c0_92 = arith.constant 0 : index
    %c0_93 = arith.constant 0 : index
    %108 = vector.load %arg4[%c0_91, %c19, %c0_92, %c0_93] : memref<1x32x8x128xf32, #tpu.memory_space<vmem>>, vector<1x1x8x128xf32>
    %109 = vector.shape_cast %108 : vector<1x1x8x128xf32> to vector<8x128xf32>
    %110 = vector.shape_cast %107 : vector<8x128xf32> to vector<1x1x8x128xf32>
    tpu.vector_store %arg4[%c0_91, %c19, %c0_92, %c0_93], %110 {strides = array<i32>} : memref<1x32x8x128xf32, #tpu.memory_space<vmem>>, vector<1x1x8x128xf32>,
    %111 = vector.extract_strided_slice %4 {offsets = [64, 256], sizes = [16, 128], strides = [1, 1]} : vector<128x512xbf16> to vector<16x128xbf16>
    %cst_94 = arith.constant dense<0.000000e+00> : vector<8x128xf32>
    %112 = tpu.matmul %90, %111, %cst_94 {dimension_numbers = #tpu.dot_dimension_numbers<[1], [0], [0], [1], [0, 0, 1, 1], [], []>} : vector<8x16xbf16>, vector<16x128xbf16>, vector<8x128xf32> -> vector<8x128xf32>
    %c0_95 = arith.constant 0 : index
    %c20 = arith.constant 20 : index
    %c0_96 = arith.constant 0 : index
    %c0_97 = arith.constant 0 : index
    %113 = vector.load %arg4[%c0_95, %c20, %c0_96, %c0_97] : memref<1x32x8x128xf32, #tpu.memory_space<vmem>>, vector<1x1x8x128xf32>
    %114 = vector.shape_cast %113 : vector<1x1x8x128xf32> to vector<8x128xf32>
    %115 = vector.shape_cast %112 : vector<8x128xf32> to vector<1x1x8x128xf32>
    tpu.vector_store %arg4[%c0_95, %c20, %c0_96, %c0_97], %115 {strides = array<i32>} : memref<1x32x8x128xf32, #tpu.memory_space<vmem>>, vector<1x1x8x128xf32>,
    %116 = vector.extract_strided_slice %4 {offsets = [80, 256], sizes = [16, 128], strides = [1, 1]} : vector<128x512xbf16> to vector<16x128xbf16>
    %cst_98 = arith.constant dense<0.000000e+00> : vector<8x128xf32>
    %117 = tpu.matmul %90, %116, %cst_98 {dimension_numbers = #tpu.dot_dimension_numbers<[1], [0], [0], [1], [0, 0, 1, 1], [], []>} : vector<8x16xbf16>, vector<16x128xbf16>, vector<8x128xf32> -> vector<8x128xf32>
    %c0_99 = arith.constant 0 : index
    %c21 = arith.constant 21 : index
    %c0_100 = arith.constant 0 : index
    %c0_101 = arith.constant 0 : index
    %118 = vector.load %arg4[%c0_99, %c21, %c0_100, %c0_101] : memref<1x32x8x128xf32, #tpu.memory_space<vmem>>, vector<1x1x8x128xf32>
    %119 = vector.shape_cast %118 : vector<1x1x8x128xf32> to vector<8x128xf32>
    %120 = vector.shape_cast %117 : vector<8x128xf32> to vector<1x1x8x128xf32>
    tpu.vector_store %arg4[%c0_99, %c21, %c0_100, %c0_101], %120 {strides = array<i32>} : memref<1x32x8x128xf32, #tpu.memory_space<vmem>>, vector<1x1x8x128xf32>,
    %121 = vector.extract_strided_slice %4 {offsets = [96, 256], sizes = [16, 128], strides = [1, 1]} : vector<128x512xbf16> to vector<16x128xbf16>
    %cst_102 = arith.constant dense<0.000000e+00> : vector<8x128xf32>
    %122 = tpu.matmul %90, %121, %cst_102 {dimension_numbers = #tpu.dot_dimension_numbers<[1], [0], [0], [1], [0, 0, 1, 1], [], []>} : vector<8x16xbf16>, vector<16x128xbf16>, vector<8x128xf32> -> vector<8x128xf32>
    %c0_103 = arith.constant 0 : index
    %c22 = arith.constant 22 : index
    %c0_104 = arith.constant 0 : index
    %c0_105 = arith.constant 0 : index
    %123 = vector.load %arg4[%c0_103, %c22, %c0_104, %c0_105] : memref<1x32x8x128xf32, #tpu.memory_space<vmem>>, vector<1x1x8x128xf32>
    %124 = vector.shape_cast %123 : vector<1x1x8x128xf32> to vector<8x128xf32>
    %125 = vector.shape_cast %122 : vector<8x128xf32> to vector<1x1x8x128xf32>
    tpu.vector_store %arg4[%c0_103, %c22, %c0_104, %c0_105], %125 {strides = array<i32>} : memref<1x32x8x128xf32, #tpu.memory_space<vmem>>, vector<1x1x8x128xf32>,
    %126 = vector.extract_strided_slice %4 {offsets = [112, 256], sizes = [16, 128], strides = [1, 1]} : vector<128x512xbf16> to vector<16x128xbf16>
    %cst_106 = arith.constant dense<0.000000e+00> : vector<8x128xf32>
    %127 = tpu.matmul %90, %126, %cst_106 {dimension_numbers = #tpu.dot_dimension_numbers<[1], [0], [0], [1], [0, 0, 1, 1], [], []>} : vector<8x16xbf16>, vector<16x128xbf16>, vector<8x128xf32> -> vector<8x128xf32>
    %c0_107 = arith.constant 0 : index
    %c23 = arith.constant 23 : index
    %c0_108 = arith.constant 0 : index
    %c0_109 = arith.constant 0 : index
    %128 = vector.load %arg4[%c0_107, %c23, %c0_108, %c0_109] : memref<1x32x8x128xf32, #tpu.memory_space<vmem>>, vector<1x1x8x128xf32>
    %129 = vector.shape_cast %128 : vector<1x1x8x128xf32> to vector<8x128xf32>
    %130 = vector.shape_cast %127 : vector<8x128xf32> to vector<1x1x8x128xf32>
    tpu.vector_store %arg4[%c0_107, %c23, %c0_108, %c0_109], %130 {strides = array<i32>} : memref<1x32x8x128xf32, #tpu.memory_space<vmem>>, vector<1x1x8x128xf32>,
    %c3_110 = arith.constant 3 : index
    %c0_111 = arith.constant 0 : index
    %c0_112 = arith.constant 0 : index
    %131 = vector.load %arg2[%c3_110, %c0_111, %c0_112] : memref<4x8x16xbf16, #tpu.memory_space<vmem>>, vector<1x8x16xbf16>
    %132 = vector.shape_cast %131 : vector<1x8x16xbf16> to vector<8x16xbf16>
    %133 = vector.extract_strided_slice %4 {offsets = [0, 384], sizes = [16, 128], strides = [1, 1]} : vector<128x512xbf16> to vector<16x128xbf16>
    %cst_113 = arith.constant dense<0.000000e+00> : vector<8x128xf32>
    %134 = tpu.matmul %132, %133, %cst_113 {dimension_numbers = #tpu.dot_dimension_numbers<[1], [0], [0], [1], [0, 0, 1, 1], [], []>} : vector<8x16xbf16>, vector<16x128xbf16>, vector<8x128xf32> -> vector<8x128xf32>
    %c0_114 = arith.constant 0 : index
    %c24 = arith.constant 24 : index
    %c0_115 = arith.constant 0 : index
    %c0_116 = arith.constant 0 : index
    %135 = vector.load %arg4[%c0_114, %c24, %c0_115, %c0_116] : memref<1x32x8x128xf32, #tpu.memory_space<vmem>>, vector<1x1x8x128xf32>
    %136 = vector.shape_cast %135 : vector<1x1x8x128xf32> to vector<8x128xf32>
    %137 = vector.shape_cast %134 : vector<8x128xf32> to vector<1x1x8x128xf32>
    tpu.vector_store %arg4[%c0_114, %c24, %c0_115, %c0_116], %137 {strides = array<i32>} : memref<1x32x8x128xf32, #tpu.memory_space<vmem>>, vector<1x1x8x128xf32>,
    %138 = vector.extract_strided_slice %4 {offsets = [16, 384], sizes = [16, 128], strides = [1, 1]} : vector<128x512xbf16> to vector<16x128xbf16>
    %cst_117 = arith.constant dense<0.000000e+00> : vector<8x128xf32>
    %139 = tpu.matmul %132, %138, %cst_117 {dimension_numbers = #tpu.dot_dimension_numbers<[1], [0], [0], [1], [0, 0, 1, 1], [], []>} : vector<8x16xbf16>, vector<16x128xbf16>, vector<8x128xf32> -> vector<8x128xf32>
    %c0_118 = arith.constant 0 : index
    %c25 = arith.constant 25 : index
    %c0_119 = arith.constant 0 : index
    %c0_120 = arith.constant 0 : index
    %140 = vector.load %arg4[%c0_118, %c25, %c0_119, %c0_120] : memref<1x32x8x128xf32, #tpu.memory_space<vmem>>, vector<1x1x8x128xf32>
    %141 = vector.shape_cast %140 : vector<1x1x8x128xf32> to vector<8x128xf32>
    %142 = vector.shape_cast %139 : vector<8x128xf32> to vector<1x1x8x128xf32>
    tpu.vector_store %arg4[%c0_118, %c25, %c0_119, %c0_120], %142 {strides = array<i32>} : memref<1x32x8x128xf32, #tpu.memory_space<vmem>>, vector<1x1x8x128xf32>,
    %143 = vector.extract_strided_slice %4 {offsets = [32, 384], sizes = [16, 128], strides = [1, 1]} : vector<128x512xbf16> to vector<16x128xbf16>
    %cst_121 = arith.constant dense<0.000000e+00> : vector<8x128xf32>
    %144 = tpu.matmul %132, %143, %cst_121 {dimension_numbers = #tpu.dot_dimension_numbers<[1], [0], [0], [1], [0, 0, 1, 1], [], []>} : vector<8x16xbf16>, vector<16x128xbf16>, vector<8x128xf32> -> vector<8x128xf32>
    %c0_122 = arith.constant 0 : index
    %c26 = arith.constant 26 : index
    %c0_123 = arith.constant 0 : index
    %c0_124 = arith.constant 0 : index
    %145 = vector.load %arg4[%c0_122, %c26, %c0_123, %c0_124] : memref<1x32x8x128xf32, #tpu.memory_space<vmem>>, vector<1x1x8x128xf32>
    %146 = vector.shape_cast %145 : vector<1x1x8x128xf32> to vector<8x128xf32>
    %147 = vector.shape_cast %144 : vector<8x128xf32> to vector<1x1x8x128xf32>
    tpu.vector_store %arg4[%c0_122, %c26, %c0_123, %c0_124], %147 {strides = array<i32>} : memref<1x32x8x128xf32, #tpu.memory_space<vmem>>, vector<1x1x8x128xf32>,
    %148 = vector.extract_strided_slice %4 {offsets = [48, 384], sizes = [16, 128], strides = [1, 1]} : vector<128x512xbf16> to vector<16x128xbf16>
    %cst_125 = arith.constant dense<0.000000e+00> : vector<8x128xf32>
    %149 = tpu.matmul %132, %148, %cst_125 {dimension_numbers = #tpu.dot_dimension_numbers<[1], [0], [0], [1], [0, 0, 1, 1], [], []>} : vector<8x16xbf16>, vector<16x128xbf16>, vector<8x128xf32> -> vector<8x128xf32>
    %c0_126 = arith.constant 0 : index
    %c27 = arith.constant 27 : index
    %c0_127 = arith.constant 0 : index
    %c0_128 = arith.constant 0 : index
    %150 = vector.load %arg4[%c0_126, %c27, %c0_127, %c0_128] : memref<1x32x8x128xf32, #tpu.memory_space<vmem>>, vector<1x1x8x128xf32>
    %151 = vector.shape_cast %150 : vector<1x1x8x128xf32> to vector<8x128xf32>
    %152 = vector.shape_cast %149 : vector<8x128xf32> to vector<1x1x8x128xf32>
    tpu.vector_store %arg4[%c0_126, %c27, %c0_127, %c0_128], %152 {strides = array<i32>} : memref<1x32x8x128xf32, #tpu.memory_space<vmem>>, vector<1x1x8x128xf32>,
    %153 = vector.extract_strided_slice %4 {offsets = [64, 384], sizes = [16, 128], strides = [1, 1]} : vector<128x512xbf16> to vector<16x128xbf16>
    %cst_129 = arith.constant dense<0.000000e+00> : vector<8x128xf32>
    %154 = tpu.matmul %132, %153, %cst_129 {dimension_numbers = #tpu.dot_dimension_numbers<[1], [0], [0], [1], [0, 0, 1, 1], [], []>} : vector<8x16xbf16>, vector<16x128xbf16>, vector<8x128xf32> -> vector<8x128xf32>
    %c0_130 = arith.constant 0 : index
    %c28 = arith.constant 28 : index
    %c0_131 = arith.constant 0 : index
    %c0_132 = arith.constant 0 : index
    %155 = vector.load %arg4[%c0_130, %c28, %c0_131, %c0_132] : memref<1x32x8x128xf32, #tpu.memory_space<vmem>>, vector<1x1x8x128xf32>
    %156 = vector.shape_cast %155 : vector<1x1x8x128xf32> to vector<8x128xf32>
    %157 = vector.shape_cast %154 : vector<8x128xf32> to vector<1x1x8x128xf32>
    tpu.vector_store %arg4[%c0_130, %c28, %c0_131, %c0_132], %157 {strides = array<i32>} : memref<1x32x8x128xf32, #tpu.memory_space<vmem>>, vector<1x1x8x128xf32>,
    %158 = vector.extract_strided_slice %4 {offsets = [80, 384], sizes = [16, 128], strides = [1, 1]} : vector<128x512xbf16> to vector<16x128xbf16>
    %cst_133 = arith.constant dense<0.000000e+00> : vector<8x128xf32>
    %159 = tpu.matmul %132, %158, %cst_133 {dimension_numbers = #tpu.dot_dimension_numbers<[1], [0], [0], [1], [0, 0, 1, 1], [], []>} : vector<8x16xbf16>, vector<16x128xbf16>, vector<8x128xf32> -> vector<8x128xf32>
    %c0_134 = arith.constant 0 : index
    %c29 = arith.constant 29 : index
    %c0_135 = arith.constant 0 : index
    %c0_136 = arith.constant 0 : index
    %160 = vector.load %arg4[%c0_134, %c29, %c0_135, %c0_136] : memref<1x32x8x128xf32, #tpu.memory_space<vmem>>, vector<1x1x8x128xf32>
    %161 = vector.shape_cast %160 : vector<1x1x8x128xf32> to vector<8x128xf32>
    %162 = vector.shape_cast %159 : vector<8x128xf32> to vector<1x1x8x128xf32>
    tpu.vector_store %arg4[%c0_134, %c29, %c0_135, %c0_136], %162 {strides = array<i32>} : memref<1x32x8x128xf32, #tpu.memory_space<vmem>>, vector<1x1x8x128xf32>,
    %163 = vector.extract_strided_slice %4 {offsets = [96, 384], sizes = [16, 128], strides = [1, 1]} : vector<128x512xbf16> to vector<16x128xbf16>
    %cst_137 = arith.constant dense<0.000000e+00> : vector<8x128xf32>
    %164 = tpu.matmul %132, %163, %cst_137 {dimension_numbers = #tpu.dot_dimension_numbers<[1], [0], [0], [1], [0, 0, 1, 1], [], []>} : vector<8x16xbf16>, vector<16x128xbf16>, vector<8x128xf32> -> vector<8x128xf32>
    %c0_138 = arith.constant 0 : index
    %c30 = arith.constant 30 : index
    %c0_139 = arith.constant 0 : index
    %c0_140 = arith.constant 0 : index
    %165 = vector.load %arg4[%c0_138, %c30, %c0_139, %c0_140] : memref<1x32x8x128xf32, #tpu.memory_space<vmem>>, vector<1x1x8x128xf32>
    %166 = vector.shape_cast %165 : vector<1x1x8x128xf32> to vector<8x128xf32>
    %167 = vector.shape_cast %164 : vector<8x128xf32> to vector<1x1x8x128xf32>
    tpu.vector_store %arg4[%c0_138, %c30, %c0_139, %c0_140], %167 {strides = array<i32>} : memref<1x32x8x128xf32, #tpu.memory_space<vmem>>, vector<1x1x8x128xf32>,
    %168 = vector.extract_strided_slice %4 {offsets = [112, 384], sizes = [16, 128], strides = [1, 1]} : vector<128x512xbf16> to vector<16x128xbf16>
    %cst_141 = arith.constant dense<0.000000e+00> : vector<8x128xf32>
    %169 = tpu.matmul %132, %168, %cst_141 {dimension_numbers = #tpu.dot_dimension_numbers<[1], [0], [0], [1], [0, 0, 1, 1], [], []>} : vector<8x16xbf16>, vector<16x128xbf16>, vector<8x128xf32> -> vector<8x128xf32>
    %c0_142 = arith.constant 0 : index
    %c31 = arith.constant 31 : index
    %c0_143 = arith.constant 0 : index
    %c0_144 = arith.constant 0 : index
    %170 = vector.load %arg4[%c0_142, %c31, %c0_143, %c0_144] : memref<1x32x8x128xf32, #tpu.memory_space<vmem>>, vector<1x1x8x128xf32>
    %171 = vector.shape_cast %170 : vector<1x1x8x128xf32> to vector<8x128xf32>
    %172 = vector.shape_cast %169 : vector<8x128xf32> to vector<1x1x8x128xf32>
    tpu.vector_store %arg4[%c0_142, %c31, %c0_143, %c0_144], %172 {strides = array<i32>} : memref<1x32x8x128xf32, #tpu.memory_space<vmem>>, vector<1x1x8x128xf32>,
    return
  }
  func.func @transform_0(%arg0: i32) -> (i32, i32) {
    %c0_i32 = arith.constant 0 : i32
    %c0_i32_0 = arith.constant 0 : i32
    %c0_i32_1 = arith.constant 0 : i32
    return %c0_i32, %c0_i32_0 : i32, i32
  }
  func.func @transform_1(%arg0: i32) -> (i32, i32, i32) {
    %c0_i32 = arith.constant 0 : i32
    %c0_i32_0 = arith.constant 0 : i32
    %c0_i32_1 = arith.constant 0 : i32
    return %arg0, %c0_i32, %c0_i32_0 : i32, i32, i32
  }
  func.func @transform_2(%arg0: i32) -> (i32, i32, i32) {
    %c0_i32 = arith.constant 0 : i32
    %c0_i32_0 = arith.constant 0 : i32
    %c0_i32_1 = arith.constant 0 : i32
    return %arg0, %c0_i32, %c0_i32_0 : i32, i32, i32
  }
  func.func @transform_3(%arg0: i32) -> (i32, i32, i32, i32) {
    %c0_i32 = arith.constant 0 : i32
    %c0_i32_0 = arith.constant 0 : i32
    %c0_i32_1 = arith.constant 0 : i32
    %c0_i32_2 = arith.constant 0 : i32
    return %arg0, %c0_i32, %c0_i32_0, %c0_i32_1 : i32, i32, i32, i32
  }
}

</mosaic_0001>

<bundles_post_ra>
// kernel: _cutouts_pallas.1
= control target key start
LH: loop header
LB: loop body
LE: loop exit
PB: predicated region body
PF: predicated region fallthrough
CT: control target
= control target key end

     0   :  { %s1461_s0 = inlined_call_operand.vmem [shape: bf16[128,16], index: 0, kind: input, shape index: {}]   ;;  %s1462_s1 = inlined_call_operand.vmem [shape: bf16[4,8,16], index: 1, kind: input, shape index: {}]   ;;  %s1463_s2 = inlined_call_operand.vmem [shape: bf16[1,16,512], index: 2, kind: input, shape index: {}]   ;;  %s1464_s3 = inlined_call_operand.hbm [shape: f32[1,32,8,128], index: 3, kind: output, shape index: {}]  }
   0x1   :  { %v1059_v0 = vld [vmem:[%s1463_s2] sm:$0xf]  ;;  %v1150_v1 = vld [vmem:[%s1463_s2 + $0xc] sm:$0xf0]  ;;  %v1148_v2 = vld [vmem:[%s1463_s2 + $0x4] sm:$0xf] }
   0x2   :  { %v1060_v3 = vor.u32 %v1150_v1, %v1059_v0  ;;  %v1061_v4 = vld [vmem:[%s1463_s2 + $0x10] sm:$0xf0]  ;;  %v1140_v6 = vld [vmem:[%s1461_s0] sm:$0xff] }
   0x3   :  { %v1064_v5 = vor.u32 %v1148_v2, %v1061_v4 }
   0x4   :  { %8 = vsyncpa [#allocation3], 0  ;;  %128 = vmatpush.bf16.msra.mxu0 %v1060_v3  ;;  %vm96_vm0 = vcmask 130048   ;;  %v1067_v7 = vld [vmem:[%s1463_s2 + $0x8] sm:$0xf]  ;;  %v1142_v14 = vld [vmem:[%s1461_s0 + $0x10] sm:$0xff] }
   0x5   :  { %177 = vmatpush.bf16.msra.mxu1 %v1064_v5  ;;  %v1151_v8 = vld [vmem:[%s1463_s2 + $0x14] sm:$0xf0]  ;;  %v1149_v9 = vld [vmem:[%s1463_s2 + $0xc] sm:$0xf]  ;;  %v1069_v11 = vld [vmem:[%s1463_s2 + $0x18] sm:$0xf0] }
   0x6   :  { %v1068_v10 = vor.u32 %v1151_v8, %v1067_v7  ;;  %v1072_v12 = vor.u32 %v1149_v9, %v1069_v11  ;;  %v1141_v13 = vld [vmem:[%s1461_s0 + $0x8] sm:$0xff]  ;;  %v1143_v15 = vld [vmem:[%s1461_s0 + $0x18] sm:$0xff]  ;;  %v1144_v16 = vld [vmem:[%s1461_s0 + $0x20] sm:$0xff]  ;;  %s1013_s26 = sshll.u32 %s1464_s3, 4  ;;  %s1182_s27 = smov 128   ;;  %s1014_s26 = int_to_ptr.hbm [resolvable:$true] %s1013_s26 }
   0x7   :  { %1073 = vmatmul.msk.bf16.vlgmr.msra.gmra.mxu0 %vm96_vm0, %v1140_v6  ;;  %v1145_v17 = vld [vmem:[%s1461_s0 + $0x28] sm:$0xff]  ;;  %v1146_v18 = vld [vmem:[%s1461_s0 + $0x30] sm:$0xff]  ;;  %v1147_v19 = vld [vmem:[%s1461_s0 + $0x38] sm:$0xff]  ;;  %s1183_s28 = smov 8  }
   0x8   :  { %1081 = vmatmul.msk.bf16.vlgmr.msra.gmra.mxu1 %vm96_vm0, %v1140_v6  ;;  %226 = vmatpush.bf16.msra.mxu2 %v1068_v10  ;;  %v1299_v50 = vld [vmem:[%s1462_s1] sm:$0xf] }
   0x9   :  { %275 = vmatpush.bf16.msra.mxu3 %v1072_v12 }
   0xb   :  { %1089 = vmatmul.msk.bf16.vlgmr.msra.gmra.mxu2 %vm96_vm0, %v1140_v6 }
   0xc   :  { %1097 = vmatmul.msk.bf16.vlgmr.msra.gmra.mxu3 %vm96_vm0, %v1140_v6 }
  0x17   :  { %1074 = vmatmul.msk.bf16.gmra.mxu0 %vm96_vm0, %v1141_v13 }
  0x18   :  { %1082 = vmatmul.msk.bf16.gmra.mxu1 %vm96_vm0, %v1141_v13 }
  0x1b   :  { %1090 = vmatmul.msk.bf16.gmra.mxu2 %vm96_vm0, %v1141_v13 }
  0x1c   :  { %1098 = vmatmul.msk.bf16.gmra.mxu3 %vm96_vm0, %v1141_v13 }
  0x27   :  { %1075 = vmatmul.msk.bf16.gmra.mxu0 %vm96_vm0, %v1142_v14 }
  0x28   :  { %1083 = vmatmul.msk.bf16.gmra.mxu1 %vm96_vm0, %v1142_v14 }
  0x2b   :  { %1091 = vmatmul.msk.bf16.gmra.mxu2 %vm96_vm0, %v1142_v14 }
  0x2c   :  { %1099 = vmatmul.msk.bf16.gmra.mxu3 %vm96_vm0, %v1142_v14 }
  0x37   :  { %1076 = vmatmul.msk.bf16.gmra.mxu0 %vm96_vm0, %v1143_v15 }
  0x38   :  { %1084 = vmatmul.msk.bf16.gmra.mxu1 %vm96_vm0, %v1143_v15 }
  0x3b   :  { %1092 = vmatmul.msk.bf16.gmra.mxu2 %vm96_vm0, %v1143_v15 }
  0x3c   :  { %1100 = vmatmul.msk.bf16.gmra.mxu3 %vm96_vm0, %v1143_v15 }
  0x47   :  { %1077 = vmatmul.msk.bf16.gmra.mxu0 %vm96_vm0, %v1144_v16 }
  0x48   :  { %1085 = vmatmul.msk.bf16.gmra.mxu1 %vm96_vm0, %v1144_v16 }
  0x4b   :  { %1093 = vmatmul.msk.bf16.gmra.mxu2 %vm96_vm0, %v1144_v16 }
  0x4c   :  { %1101 = vmatmul.msk.bf16.gmra.mxu3 %vm96_vm0, %v1144_v16 }
  0x57   :  { %1078 = vmatmul.msk.bf16.gmra.mxu0 %vm96_vm0, %v1145_v17 }
  0x58   :  { %1086 = vmatmul.msk.bf16.gmra.mxu1 %vm96_vm0, %v1145_v17 }
  0x5b   :  { %1094 = vmatmul.msk.bf16.gmra.mxu2 %vm96_vm0, %v1145_v17 }
  0x5c   :  { %1102 = vmatmul.msk.bf16.gmra.mxu3 %vm96_vm0, %v1145_v17 }
  0x67   :  { %1079 = vmatmul.msk.bf16.gmra.mxu0 %vm96_vm0, %v1146_v18 }
  0x68   :  { %1087 = vmatmul.msk.bf16.gmra.mxu1 %vm96_vm0, %v1146_v18 }
  0x6b   :  { %1095 = vmatmul.msk.bf16.gmra.mxu2 %vm96_vm0, %v1146_v18 }
  0x6c   :  { %1103 = vmatmul.msk.bf16.gmra.mxu3 %vm96_vm0, %v1146_v18 }
  0x77   :  { %1080 = vmatmul.msk.bf16.gmra.mxu0 %vm96_vm0, %v1147_v19 }
  0x78   :  { %1088 = vmatmul.msk.bf16.gmra.mxu1 %vm96_vm0, %v1147_v19 }
  0x7b   :  { %1096 = vmatmul.msk.bf16.gmra.mxu2 %vm96_vm0, %v1147_v19 }
  0x7c   :  { %1104 = vmatmul.msk.bf16.gmra.mxu3 %vm96_vm0, %v1147_v19 }
  0x84   :  { %v130_v20 = vpop.f32.mrf.mxu0 }
  0x85   :  { %v179_v21 = vpop.f32.mrf.mxu1 }
  0x86   :  { %v317_v22 = vpack.c.bf16 %v179_v21, %v130_v20 }
  0x88   :  { %v352_v26 = vunpack.c.l.b16 %v317_v22  ;;  %v522_v27 = vunpack.c.h.b16 %v317_v22 }
  0x8c   :  { %v132_v23 = vpop.f32.mrf.mxu0 }
  0x8d   :  { %v181_v24 = vpop.f32.mrf.mxu1 }
  0x8e   :  { %v319_v25 = vpack.c.bf16 %v181_v24, %v132_v23  ;;  %v1286_v34 = vpop.f32.mrf.mxu2 }
  0x8f   :  { %v1288_v35 = vpop.f32.mrf.mxu3 }
  0x90   :  { %v523_v28 = vunpack.c.h.b16 %v319_v25  ;;  %v353_v29 = vunpack.c.l.b16 %v319_v25 }
  0x92   :  { %v1284_v30 = vpack.c.b16 %v523_v28, %v522_v27  ;;  %v354_v31 = vpack.c.b16 %v353_v29, %v352_v26 }
  0x94   :  { %366 = vmatpush.bf16.msrb.mxu0 %v354_v31  ;;  %v135_v32 = vpop.f32.mrf.mxu0 }
  0x95   :  { %v184_v33 = vpop.f32.mrf.mxu1 }
  0x96   :  { %v321_v36 = vpack.c.bf16 %v184_v33, %v135_v32  ;;  %v1290_v40 = vpop.f32.mrf.mxu2 }
  0x97   :  { %v1292_v41 = vpop.f32.mrf.mxu3  ;;  %1105 = vmatmul.msk.bf16.vlgmr.msrb.gmra.mxu0 %vm96_vm0, %v1299_v50 }
  0x98   :  { %v375_v42 = vunpack.c.l.b16 %v321_v36  ;;  %v544_v43 = vunpack.c.h.b16 %v321_v36 }
  0x9c   :  { %v137_v37 = vpop.f32.mrf.mxu0 }
  0x9d   :  { %v186_v38 = vpop.f32.mrf.mxu1 }
  0x9e   :  { %v323_v39 = vpack.c.bf16 %v186_v38, %v137_v37  ;;  %v1301_v51 = vpop.f32.mrf.mxu2 }
  0x9f   :  { %v1303_v52 = vpop.f32.mrf.mxu3 }
  0xa0   :  { %v545_v44 = vunpack.c.h.b16 %v323_v39  ;;  %v376_v45 = vunpack.c.l.b16 %v323_v39 }
  0xa2   :  { %v1294_v46 = vpack.c.b16 %v545_v44, %v544_v43  ;;  %v377_v47 = vpack.c.b16 %v376_v45, %v375_v42  ;;  %v1342_v45 = vpack.c.bf16 %v1288_v35, %v1286_v34  ;;  %v1353_v34 = vld [vmem:[%s1462_s1 + $0x4] sm:$0xf] }
  0xa4   :  { %386 = vmatpush.bf16.msrb.mxu1 %v377_v47  ;;  %v140_v48 = vpop.f32.mrf.mxu0  ;;  %v1346_v47 = vpack.c.bf16 %v1292_v41, %v1290_v40 }
  0xa5   :  { %v189_v49 = vpop.f32.mrf.mxu1 }
  0xa6   :  { %v325_v53 = vpack.c.bf16 %v189_v49, %v140_v48  ;;  %v1309_v57 = vpop.f32.mrf.mxu2 }
  0xa7   :  { %1106 = vmatmul.msk.bf16.vlgmr.msrb.gmra.mxu1 %vm96_vm0, %v1299_v50  ;;  %v1311_v58 = vpop.f32.mrf.mxu3 }
  0xa8   :  { %v396_v59 = vunpack.c.l.b16 %v325_v53  ;;  %v563_v60 = vunpack.c.h.b16 %v325_v53 }
  0xac   :  { %v142_v54 = vpop.f32.mrf.mxu0 }
  0xad   :  { %v191_v55 = vpop.f32.mrf.mxu1 }
  0xae   :  { %v327_v56 = vpack.c.bf16 %v191_v55, %v142_v54  ;;  %v1315_v3 = vpop.f32.mrf.mxu2  ;;  %v681_v55 = vunpack.c.l.b16 %v1342_v45 }
  0xaf   :  { %v1317_v4 = vpop.f32.mrf.mxu3 }
  0xb0   :  { %v564_v61 = vunpack.c.h.b16 %v327_v56  ;;  %v397_v62 = vunpack.c.l.b16 %v327_v56  ;;  %v682_v56 = vunpack.c.l.b16 %v1346_v47 }
  0xb2   :  { %v1313_v63 = vpack.c.b16 %v564_v61, %v563_v60  ;;  %v398_v0 = vpack.c.b16 %v397_v62, %v396_v59  ;;  %v683_v40 = vpack.c.b16 %v682_v56, %v681_v55  ;;  %v853_v55 = vunpack.c.h.b16 %v1346_v47 }
  0xb4   :  { %407 = vmatpush.bf16.msrb.mxu2 %v398_v0  ;;  %v145_v1 = vpop.f32.mrf.mxu0 }
  0xb5   :  { %v194_v2 = vpop.f32.mrf.mxu1 }
  0xb6   :  { %v329_v5 = vpack.c.bf16 %v194_v2, %v145_v1  ;;  %v1321_v9 = vpop.f32.mrf.mxu2 }
  0xb7   :  { %1107 = vmatmul.msk.bf16.vlgmr.msrb.gmra.mxu2 %vm96_vm0, %v1299_v50  ;;  %v1323_v10 = vpop.f32.mrf.mxu3 }
  0xb8   :  { %v417_v11 = vunpack.c.l.b16 %v329_v5  ;;  %v582_v12 = vunpack.c.h.b16 %v329_v5 }
  0xbc   :  { %v147_v6 = vpop.f32.mrf.mxu0 }
  0xbd   :  { %v196_v7 = vpop.f32.mrf.mxu1 }
  0xbe   :  { %v331_v8 = vpack.c.bf16 %v196_v7, %v147_v6  ;;  %v1327_v19 = vpop.f32.mrf.mxu2 }
  0xbf   :  { %v1329_v20 = vpop.f32.mrf.mxu3 }
  0xc0   :  { %v583_v13 = vunpack.c.h.b16 %v331_v8  ;;  %v418_v14 = vunpack.c.l.b16 %v331_v8 }
  0xc2   :  { %v1325_v15 = vpack.c.b16 %v583_v13, %v582_v12  ;;  %v419_v16 = vpack.c.b16 %v418_v14, %v417_v11  ;;  %v1370_v11 = vpack.c.bf16 %v1311_v58, %v1309_v57 }
  0xc4   :  { %428 = vmatpush.bf16.msrb.mxu3 %v419_v16  ;;  %v150_v17 = vpop.f32.mrf.mxu0 }
  0xc5   :  { %v199_v18 = vpop.f32.mrf.mxu1 }
  0xc6   :  { %v333_v21 = vpack.c.bf16 %v199_v18, %v150_v17  ;;  %v1333_v25 = vpop.f32.mrf.mxu2 }
  0xc7   :  { %1108 = vmatmul.msk.bf16.vlgmr.msrb.gmra.mxu3 %vm96_vm0, %v1299_v50  ;;  %v1335_v26 = vpop.f32.mrf.mxu3 }
  0xc8   :  { %v438_v27 = vunpack.c.l.b16 %v333_v21  ;;  %v601_v32 = vunpack.c.h.b16 %v333_v21 }
  0xcc   :  { %v152_v22 = vpop.f32.mrf.mxu0 }
  0xcd   :  { %v201_v23 = vpop.f32.mrf.mxu1 }
  0xce   :  { %v335_v24 = vpack.c.bf16 %v201_v23, %v152_v22  ;;  %v248_v38 = vpop.f32.mrf.mxu2  ;;  %v706_v23 = vunpack.c.l.b16 %v1370_v11 }
  0xcf   :  { %v297_v39 = vpop.f32.mrf.mxu3 }
  0xd0   :  { %v439_v28 = vunpack.c.l.b16 %v335_v24  ;;  %v602_v31 = vunpack.c.h.b16 %v335_v24  ;;  %v1360_v7 = vpack.c.bf16 %v297_v39, %v248_v38 }
  0xd2   :  { %v440_v29 = vpack.c.b16 %v439_v28, %v438_v27  ;;  %v603_v37 = vpack.c.b16 %v602_v31, %v601_v32  ;;  %v768_v16 = vunpack.c.l.b16 %v1360_v7 }
  0xd4   :  { %449 = vmatpush.bf16.msra.mxu0 %v440_v29  ;;  %v155_v33 = vpop.f32.mrf.mxu0 }
  0xd5   :  { %v204_v36 = vpop.f32.mrf.mxu1 }
  0xd6   :  { %v337_v42 = vpack.c.bf16 %v204_v36, %v155_v33  ;;  %v250_v53 = vpop.f32.mrf.mxu2 }
  0xd7   :  { %1109 = vmatmul.msk.bf16.vlgmr.msra.gmra.mxu0 %vm96_vm0, %v1299_v50  ;;  %v299_v54 = vpop.f32.mrf.mxu3 }
  0xd8   :  { %536 = vmatpush.bf16.msrb.mxu0 %v1284_v30  ;;  %v459_v30 = vunpack.c.l.b16 %v337_v42  ;;  %v620_v61 = vunpack.c.h.b16 %v337_v42  ;;  %v1362_v8 = vpack.c.bf16 %v299_v54, %v250_v53  ;;  %v1389_v42 = vpack.c.bf16 %v1317_v4, %v1315_v3 }
  0xd9   :  { %v852_v54 = vunpack.c.h.b16 %v1342_v45 }
  0xda   :  { %v769_v17 = vunpack.c.l.b16 %v1362_v8  ;;  %v726_v56 = vunpack.c.l.b16 %v1389_v42 }
  0xdb   :  { %v854_v45 = vpack.c.b16 %v853_v55, %v852_v54 }
  0xdc   :  { %612 = vmatpush.bf16.msra.mxu0 %v603_v37  ;;  %v157_v43 = vpop.f32.mrf.mxu0  ;;  %v770_v58 = vpack.c.b16 %v769_v17, %v768_v16  ;;  %v931_v16 = vunpack.c.h.b16 %v1360_v7  ;;  %v932_v17 = vunpack.c.h.b16 %v1362_v8 }
  0xdd   :  { %v206_v44 = vpop.f32.mrf.mxu1 }
  0xde   :  { %v339_v48 = vpack.c.bf16 %v206_v44, %v157_v43  ;;  %v253_v0 = vpop.f32.mrf.mxu2  ;;  %v1393_v43 = vpack.c.bf16 %v1323_v10, %v1321_v9  ;;  %v1405_v9 = vld [vmem:[%s1462_s1 + $0x8] sm:$0xf] }
  0xdf   :  { %v302_v1 = vpop.f32.mrf.mxu3 }
  0xe0   :  { %v460_v49 = vunpack.c.l.b16 %v339_v48  ;;  %v621_v60 = vunpack.c.h.b16 %v339_v48  ;;  %v1383_v37 = vpack.c.bf16 %v302_v1, %v253_v0  ;;  %v727_v3 = vunpack.c.l.b16 %v1393_v43 }
  0xe2   :  { %v461_v59 = vpack.c.b16 %v460_v49, %v459_v30  ;;  %v622_v41 = vpack.c.b16 %v621_v60, %v620_v61  ;;  %v789_v30 = vunpack.c.l.b16 %v1383_v37  ;;  %v728_v47 = vpack.c.b16 %v727_v3, %v726_v56 }
  0xe4   :  { %470 = vmatpush.bf16.msra.mxu1 %v461_v59  ;;  %v160_v62 = vpop.f32.mrf.mxu0 }
  0xe5   :  { %v209_v35 = vpop.f32.mrf.mxu1 }
  0xe6   :  { %v341_v2 = vpack.c.bf16 %v209_v35, %v160_v62  ;;  %v255_v18 = vpop.f32.mrf.mxu2 }
  0xe7   :  { %1110 = vmatmul.msk.bf16.vlgmr.msra.gmra.mxu1 %vm96_vm0, %v1299_v50  ;;  %1114 = vmatmul.msk.bf16.vlgmr.msrb.gmra.mxu0 %vm96_vm0, %v1353_v34  ;;  %v304_v21 = vpop.f32.mrf.mxu3 }
  0xe8   :  { %555 = vmatpush.bf16.msrb.mxu1 %v1294_v46  ;;  %695 = vmatpush.bf16.msrb.mxu0 %v683_v40  ;;  %v1366_v46 = vpack.c.bf16 %v1303_v52, %v1301_v51  ;;  %v480_v13 = vunpack.c.l.b16 %v341_v2  ;;  %v639_v27 = vunpack.c.h.b16 %v341_v2  ;;  %v1385_v38 = vpack.c.bf16 %v304_v21, %v255_v18 }
  0xe9   :  { %v332_v40 = vpack.c.bf16 %v1335_v26, %v1333_v25  ;;  %v893_v21 = vunpack.c.h.b16 %v1389_v42 }
  0xea   :  { %v705_v22 = vunpack.c.l.b16 %v1366_v46  ;;  %v790_v49 = vunpack.c.l.b16 %v1385_v38 }
  0xec   :  { %631 = vmatpush.bf16.msra.mxu1 %v622_v41  ;;  %v162_v5 = vpop.f32.mrf.mxu0  ;;  %v707_v28 = vpack.c.b16 %v706_v23, %v705_v22  ;;  %v791_v10 = vpack.c.b16 %v790_v49, %v789_v30  ;;  %v894_v22 = vunpack.c.h.b16 %v1393_v43  ;;  %v950_v23 = vunpack.c.h.b16 %v1383_v37 }
  0xed   :  { %v211_v6 = vpop.f32.mrf.mxu1 }
  0xee   :  { %v343_v12 = vpack.c.bf16 %v211_v6, %v162_v5  ;;  %v258_v31 = vpop.f32.mrf.mxu2  ;;  %v874_v5 = vunpack.c.h.b16 %v1366_v46  ;;  %v875_v6 = vunpack.c.h.b16 %v1370_v11 }
  0xef   :  { %v307_v32 = vpop.f32.mrf.mxu3 }
  0xf0   :  { %v481_v14 = vunpack.c.l.b16 %v343_v12  ;;  %v640_v51 = vunpack.c.h.b16 %v343_v12  ;;  %v876_v18 = vpack.c.b16 %v875_v6, %v874_v5 }
  0xf2   :  { %v482_v24 = vpack.c.b16 %v481_v14, %v480_v13  ;;  %v641_v29 = vpack.c.b16 %v640_v51, %v639_v27  ;;  %v748_v13 = vunpack.c.l.b16 %v332_v40 }
  0xf4   :  { %491 = vmatpush.bf16.msra.mxu2 %v482_v24  ;;  %v165_v52 = vpop.f32.mrf.mxu0  ;;  %v951_v24 = vunpack.c.h.b16 %v1385_v38 }
  0xf5   :  { %v214_v57 = vpop.f32.mrf.mxu1 }
  0xf6   :  { %v345_v33 = vpack.c.bf16 %v214_v57, %v165_v52  ;;  %v260_v59 = vpop.f32.mrf.mxu2  ;;  %v895_v52 = vpack.c.b16 %v894_v22, %v893_v21  ;;  %v952_v27 = vpack.c.b16 %v951_v24, %v950_v23  ;;  %v1131_v57 = vld [vmem:[%s1462_s1 + $0xc] sm:$0xf]  ;;  %s1181_s1 = smov [#allocation2]  }
  0xf7   :  { %1111 = vmatmul.msk.bf16.vlgmr.msra.gmra.mxu2 %vm96_vm0, %v1299_v50  ;;  %1115 = vmatmul.msk.bf16.vlgmr.msrb.gmra.mxu1 %vm96_vm0, %v1353_v34  ;;  %v309_v60 = vpop.f32.mrf.mxu3  ;;  %s1011_s23 = sshll.u32 %s1181_s1, 4  ;;  %s1012_s23 = int_to_ptr.vmem [resolvable:$true] %s1011_s23 }
  0xf8   :  { %574 = vmatpush.bf16.msrb.mxu2 %v1313_v63  ;;  %1118 = vmatmul.msk.bf16.vlgmr.msra.gmra.mxu0 %vm96_vm0, %v1353_v34  ;;  %v501_v44 = vunpack.c.l.b16 %v345_v33  ;;  %v658_v61 = vunpack.c.h.b16 %v345_v33  ;;  %v344_v35 = vpack.c.bf16 %v309_v60, %v260_v59 }
  0xf9   :  { %716 = vmatpush.bf16.msrb.mxu1 %v707_v28  ;;  %779 = vmatpush.bf16.msra.mxu0 %v770_v58  ;;  %v913_v28 = vunpack.c.h.b16 %v332_v40 }
  0xfa   :  { %v811_v2 = vunpack.c.l.b16 %v344_v35 }
  0xfc   :  { %650 = vmatpush.bf16.msra.mxu2 %v641_v29  ;;  %v167_v36 = vpop.f32.mrf.mxu0 }
  0xfd   :  { %v216_v63 = vpop.f32.mrf.mxu1 }
  0xfe   :  { %v347_v39 = vpack.c.bf16 %v216_v63, %v167_v36  ;;  %v263_v41 = vpop.f32.mrf.mxu2 }
  0xff   :  { %v312_v0 = vpop.f32.mrf.mxu3 }
 0x100   :  { %v502_v48 = vunpack.c.l.b16 %v347_v39  ;;  %v659_v4 = vunpack.c.h.b16 %v347_v39  ;;  %v346_v7 = vpack.c.bf16 %v312_v0, %v263_v41 }
 0x102   :  { %v503_v53 = vpack.c.b16 %v502_v48, %v501_v44  ;;  %v660_v62 = vpack.c.b16 %v659_v4, %v658_v61  ;;  %v831_v46 = vunpack.c.l.b16 %v346_v7  ;;  %v988_v33 = vunpack.c.h.b16 %v346_v7 }
 0x104   :  { %512 = vmatpush.bf16.msra.mxu3 %v503_v53 }
 0x106   :  { %v265_v25 = vpop.f32.mrf.mxu2 }
 0x107   :  { %1112 = vmatmul.msk.bf16.vlgmr.msra.gmra.mxu3 %vm96_vm0, %v1299_v50  ;;  %1116 = vmatmul.msk.bf16.vlgmr.msrb.gmra.mxu2 %vm96_vm0, %v1353_v34  ;;  %v330_v50 = vpack.c.bf16 %v1329_v20, %v1327_v19  ;;  %v933_v20 = vpack.c.b16 %v932_v17, %v931_v16  ;;  %v314_v26 = vpop.f32.mrf.mxu3 }
 0x108   :  { %593 = vmatpush.bf16.msrb.mxu3 %v1325_v15  ;;  %1119 = vmatmul.msk.bf16.vlgmr.msra.gmra.mxu1 %vm96_vm0, %v1353_v34  ;;  %v342_v15 = vpack.c.bf16 %v307_v32, %v258_v31  ;;  %v348_v8 = vpack.c.bf16 %v314_v26, %v265_v25 }
 0x109   :  { %1123 = vmatmul.msk.bf16.vlgmr.msrb.gmra.mxu0 %vm96_vm0, %v1405_v9  ;;  %800 = vmatpush.bf16.msra.mxu1 %v791_v10  ;;  %v747_v12 = vunpack.c.l.b16 %v330_v50  ;;  %v912_v58 = vunpack.c.h.b16 %v330_v50 }
 0x10a   :  { %866 = vmatpush.bf16.msrb.mxu0 %v854_v45  ;;  %737 = vmatpush.bf16.msrb.mxu2 %v728_v47  ;;  %v810_v1 = vunpack.c.l.b16 %v342_v15  ;;  %v832_v11 = vunpack.c.l.b16 %v348_v8  ;;  %v969_v29 = vunpack.c.h.b16 %v342_v15  ;;  %v989_v36 = vunpack.c.h.b16 %v348_v8 }
 0x10b   :  { %v749_v19 = vpack.c.b16 %v748_v13, %v747_v12  ;;  %v914_v31 = vpack.c.b16 %v913_v28, %v912_v58 }
 0x10c   :  { %669 = vmatpush.bf16.msra.mxu3 %v660_v62  ;;  %v812_v14 = vpack.c.b16 %v811_v2, %v810_v1  ;;  %v833_v51 = vpack.c.b16 %v832_v11, %v831_v46  ;;  %v990_v63 = vpack.c.b16 %v989_v36, %v988_v33 }
 0x114   :  { %v368_v37 = vpop.f32.mrf.mxu0 }
 0x115   :  { %372 = vst [vmem:[#allocation2] sm:$0xff] %v368_v37 }
 0x117   :  { %1117 = vmatmul.msk.bf16.vlgmr.msrb.gmra.mxu3 %vm96_vm0, %v1353_v34  ;;  %1120 = vmatmul.msk.bf16.vlgmr.msra.gmra.mxu2 %vm96_vm0, %v1353_v34 }
 0x118   :  { %1124 = vmatmul.msk.bf16.vlgmr.msrb.gmra.mxu1 %vm96_vm0, %v1405_v9  ;;  %821 = vmatpush.bf16.msra.mxu2 %v812_v14 }
 0x119   :  { %885 = vmatpush.bf16.msrb.mxu1 %v876_v18  ;;  %758 = vmatpush.bf16.msrb.mxu3 %v749_v19 }
 0x11a   :  { %1127 = vmatmul.msk.bf16.vlgmr.msra.gmra.mxu0 %vm96_vm0, %v1405_v9 }
 0x11b   :  { %942 = vmatpush.bf16.msra.mxu0 %v933_v20 }
 0x11c   :  { %v370_v43 = vpop.f32.mrf.mxu0 }
 0x124   :  { %v388_v38 = vpop.f32.mrf.mxu1 }
 0x125   :  { %393 = vst [vmem:[#allocation2 + $0x8] sm:$0xff] %v388_v38 }
 0x127   :  { %1121 = vmatmul.msk.bf16.vlgmr.msra.gmra.mxu3 %vm96_vm0, %v1353_v34  ;;  %1125 = vmatmul.msk.bf16.vlgmr.msrb.gmra.mxu2 %vm96_vm0, %v1405_v9  ;;  %v970_v34 = vunpack.c.h.b16 %v344_v35 }
 0x128   :  { %904 = vmatpush.bf16.msrb.mxu2 %v895_v52  ;;  %842 = vmatpush.bf16.msra.mxu3 %v833_v51 }
 0x129   :  { %1128 = vmatmul.msk.bf16.vlgmr.msra.gmra.mxu1 %vm96_vm0, %v1405_v9  ;;  %v971_v32 = vpack.c.b16 %v970_v34, %v969_v29 }
 0x12a   :  { %961 = vmatpush.bf16.msra.mxu1 %v952_v27  ;;  %1132 = vmatmul.msk.bf16.vlgmr.msrb.gmra.mxu0 %vm96_vm0, %v1131_v57 }
 0x12c   :  { %v390_v44 = vpop.f32.mrf.mxu1 }
 0x137   :  { %1126 = vmatmul.msk.bf16.vlgmr.msrb.gmra.mxu3 %vm96_vm0, %v1405_v9  ;;  %1129 = vmatmul.msk.bf16.vlgmr.msra.gmra.mxu2 %vm96_vm0, %v1405_v9 }
 0x138   :  { %923 = vmatpush.bf16.msrb.mxu3 %v914_v31  ;;  %980 = vmatpush.bf16.msra.mxu2 %v971_v32 }
 0x139   :  { %1133 = vmatmul.msk.bf16.vlgmr.msrb.gmra.mxu1 %vm96_vm0, %v1131_v57 }
 0x13a   :  { %1136 = vmatmul.msk.bf16.vlgmr.msra.gmra.mxu0 %vm96_vm0, %v1131_v57  ;;  %v409_v39 = vpop.f32.mrf.mxu2 }
 0x13b   :  { %414 = vst [vmem:[#allocation2 + $0x10] sm:$0xff] %v409_v39 }
 0x142   :  { %v411_v48 = vpop.f32.mrf.mxu2 }
 0x147   :  { %1130 = vmatmul.msk.bf16.vlgmr.msra.gmra.mxu3 %vm96_vm0, %v1405_v9  ;;  %1134 = vmatmul.msk.bf16.vlgmr.msrb.gmra.mxu2 %vm96_vm0, %v1131_v57 }
 0x148   :  { %999 = vmatpush.bf16.msra.mxu3 %v990_v63 }
 0x149   :  { %1137 = vmatmul.msk.bf16.vlgmr.msra.gmra.mxu1 %vm96_vm0, %v1131_v57 }
 0x14a   :  { %v430_v42 = vpop.f32.mrf.mxu3 }
 0x14b   :  { %435 = vst [vmem:[#allocation2 + $0x18] sm:$0xff] %v430_v42 }
 0x152   :  { %v432_v30 = vpop.f32.mrf.mxu3 }
 0x154   :  { %v451_v49 = vpop.f32.mrf.mxu0 }
 0x155   :  { %456 = vst [vmem:[#allocation2 + $0x20] sm:$0xff] %v451_v49 }
 0x157   :  { %1135 = vmatmul.msk.bf16.vlgmr.msrb.gmra.mxu3 %vm96_vm0, %v1131_v57  ;;  %1138 = vmatmul.msk.bf16.vlgmr.msra.gmra.mxu2 %vm96_vm0, %v1131_v57 }
 0x15c   :  { %v453_v53 = vpop.f32.mrf.mxu0 }
 0x164   :  { %v472_v54 = vpop.f32.mrf.mxu1  ;;  %v538_v56 = vpop.f32.mrf.mxu0 }
 0x165   :  { %477 = vst [vmem:[#allocation2 + $0x28] sm:$0xff] %v472_v54 }
 0x166   :  { %543 = vst [vmem:[#allocation2 + $0x40] sm:$0xff] %v538_v56 }
 0x167   :  { %1139 = vmatmul.msk.bf16.vlgmr.msra.gmra.mxu3 %vm96_vm0, %v1131_v57 }
 0x16c   :  { %v474_v55 = vpop.f32.mrf.mxu1  ;;  %v540_v9 = vpop.f32.mrf.mxu0 }
 0x174   :  { %v557_v3 = vpop.f32.mrf.mxu1 }
 0x175   :  { %562 = vst [vmem:[#allocation2 + $0x48] sm:$0xff] %v557_v3  ;;  %v614_v60 = vpop.f32.mrf.mxu0 }
 0x176   :  { %619 = vst [vmem:[#allocation2 + $0x60] sm:$0xff] %v614_v60 }
 0x17a   :  { %v493_v4 = vpop.f32.mrf.mxu2 }
 0x17b   :  { %498 = vst [vmem:[#allocation2 + $0x30] sm:$0xff] %v493_v4 }
 0x17c   :  { %v559_v10 = vpop.f32.mrf.mxu1 }
 0x17d   :  { %v616_v62 = vpop.f32.mrf.mxu0 }
 0x182   :  { %v495_v59 = vpop.f32.mrf.mxu2 }
 0x185   :  { %v633_v61 = vpop.f32.mrf.mxu1 }
 0x186   :  { %638 = vst [vmem:[#allocation2 + $0x68] sm:$0xff] %v633_v61  ;;  %v697_v40 = vpop.f32.mrf.mxu0 }
 0x187   :  { %702 = vst [vmem:[#allocation2 + $0x80] sm:$0xff] %v697_v40 }
 0x18a   :  { %v514_v45 = vpop.f32.mrf.mxu3  ;;  %v576_v47 = vpop.f32.mrf.mxu2 }
 0x18b   :  { %519 = vst [vmem:[#allocation2 + $0x38] sm:$0xff] %v514_v45 }
 0x18c   :  { %581 = vst [vmem:[#allocation2 + $0x50] sm:$0xff] %v576_v47 }
 0x18d   :  { %v635_v15 = vpop.f32.mrf.mxu1 }
 0x18e   :  { %v699_v2 = vpop.f32.mrf.mxu0 }
 0x192   :  { %v516_v35 = vpop.f32.mrf.mxu3  ;;  %v578_v50 = vpop.f32.mrf.mxu2 }
 0x195   :  { %v718_v41 = vpop.f32.mrf.mxu1 }
 0x196   :  { %723 = vst [vmem:[#allocation2 + $0x88] sm:$0xff] %v718_v41 }
 0x197   :  { %v781_v13 = vpop.f32.mrf.mxu0 }
 0x198   :  { %786 = vst [vmem:[#allocation2 + $0xa0] sm:$0xff] %v781_v13 }
 0x19a   :  { %v595_v0 = vpop.f32.mrf.mxu3  ;;  %v652_v1 = vpop.f32.mrf.mxu2 }
 0x19b   :  { %600 = vst [vmem:[#allocation2 + $0x58] sm:$0xff] %v595_v0 }
 0x19c   :  { %657 = vst [vmem:[#allocation2 + $0x70] sm:$0xff] %v652_v1 }
 0x19d   :  { %v720_v5 = vpop.f32.mrf.mxu1 }
 0x19f   :  { %v783_v18 = vpop.f32.mrf.mxu0 }
 0x1a2   :  { %v597_v6 = vpop.f32.mrf.mxu3  ;;  %v654_v12 = vpop.f32.mrf.mxu2 }
 0x1a6   :  { %v802_v14 = vpop.f32.mrf.mxu1 }
 0x1a7   :  { %807 = vst [vmem:[#allocation2 + $0xa8] sm:$0xff] %v802_v14  ;;  %v868_v26 = vpop.f32.mrf.mxu0 }
 0x1a8   :  { %873 = vst [vmem:[#allocation2 + $0xc0] sm:$0xff] %v868_v26 }
 0x1aa   :  { %v671_v16 = vpop.f32.mrf.mxu3  ;;  %v739_v17 = vpop.f32.mrf.mxu2 }
 0x1ab   :  { %676 = vst [vmem:[#allocation2 + $0x78] sm:$0xff] %v671_v16 }
 0x1ac   :  { %744 = vst [vmem:[#allocation2 + $0x90] sm:$0xff] %v739_v17 }
 0x1ae   :  { %v804_v19 = vpop.f32.mrf.mxu1 }
 0x1af   :  { %v870_v11 = vpop.f32.mrf.mxu0 }
 0x1b2   :  { %v673_v20 = vpop.f32.mrf.mxu3  ;;  %v741_v25 = vpop.f32.mrf.mxu2 }
 0x1b6   :  { %v887_v7 = vpop.f32.mrf.mxu1 }
 0x1b7   :  { %892 = vst [vmem:[#allocation2 + $0xc8] sm:$0xff] %v887_v7  ;;  %v944_v24 = vpop.f32.mrf.mxu0 }
 0x1b8   :  { %949 = vst [vmem:[#allocation2 + $0xe0] sm:$0xff] %v944_v24 }
 0x1ba   :  { %v760_v8 = vpop.f32.mrf.mxu3  ;;  %v823_v46 = vpop.f32.mrf.mxu2 }
 0x1bb   :  { %765 = vst [vmem:[#allocation2 + $0x98] sm:$0xff] %v760_v8 }
 0x1bc   :  { %828 = vst [vmem:[#allocation2 + $0xb0] sm:$0xff] %v823_v46 }
 0x1be   :  { %v889_v21 = vpop.f32.mrf.mxu1 }
 0x1bf   :  { %v946_v57 = vpop.f32.mrf.mxu0 }
 0x1c2   :  { %v762_v22 = vpop.f32.mrf.mxu3  ;;  %v825_v23 = vpop.f32.mrf.mxu2 }
 0x1c6   :  { %v963_v51 = vpop.f32.mrf.mxu1 }
 0x1c7   :  { %968 = vst [vmem:[#allocation2 + $0xe8] sm:$0xff] %v963_v51 }
 0x1ca   :  { %v844_v52 = vpop.f32.mrf.mxu3  ;;  %v906_v27 = vpop.f32.mrf.mxu2 }
 0x1cb   :  { %849 = vst [vmem:[#allocation2 + $0xb8] sm:$0xff] %v844_v52 }
 0x1cc   :  { %911 = vst [vmem:[#allocation2 + $0xd0] sm:$0xff] %v906_v27 }
 0x1ce   :  { %v965_v58 = vpop.f32.mrf.mxu1 }
 0x1d2   :  { %v846_v28 = vpop.f32.mrf.mxu3  ;;  %v908_v29 = vpop.f32.mrf.mxu2 }
 0x1da   :  { %v925_v34 = vpop.f32.mrf.mxu3  ;;  %v982_v31 = vpop.f32.mrf.mxu2 }
 0x1db   :  { %930 = vst [vmem:[#allocation2 + $0xd8] sm:$0xff] %v925_v34 }
 0x1dc   :  { %987 = vst [vmem:[#allocation2 + $0xf0] sm:$0xff] %v982_v31 }
 0x1e2   :  { %v927_v32 = vpop.f32.mrf.mxu3  ;;  %v984_v33 = vpop.f32.mrf.mxu2 }
 0x1ea   :  { %v1001_v36 = vpop.f32.mrf.mxu3 }
 0x1eb   :  { %1006 = vst [vmem:[#allocation2 + $0xf8] sm:$0xff] %v1001_v36 }
 0x1ec   :  { %1019 = dma.vmem_to_hbm [thread:$0]  %s1012_s23, 4096, %s1014_s26, [#allocation3], %s1182_s27, %s1182_s27, %s1183_s28  }
 0x1f2   :  { %v1003_v63 = vpop.f32.mrf.mxu3 }
 0x1f3   :  { %1179 = dma.done.wait [#allocation3], 4096  }
 0x1f4   :  { %1180 = vsyncadd [#allocation3], 4294963200 }
 0x1f5   :  { %1024 = vsyncpa [#allocation3], 1 }

</bundles_post_ra>
